<compile_context>
chip_gen: v6e
topology: v6e:2x2x1
jax: 0.10.0
libtpu: 0.0.40
codegen_flags: <defaults>
</compile_context>

<pallas_src>
import functools

import jax
import jax.numpy as jnp
from jax.experimental import pallas as pl
from jax.experimental.pallas import tpu as pltpu


# ----------------------------------------------------------------------------
# helpers
# ----------------------------------------------------------------------------
def _round_up(x, m):
    return ((x + m - 1) // m) * m


def _pad2d(a, rows, cols):
    r, c = a.shape
    if r == rows and c == cols:
        return a
    return jnp.pad(a, ((0, rows - r), (0, cols - c)))


_VMEM_LIMIT = 32 * 1024 * 1024  # explicit budget; safe on v5e/v6e/v7x


# ----------------------------------------------------------------------------
# generic Linear (+ optional ReLU) kernel:  y = x @ w + b
# ----------------------------------------------------------------------------
def _linear_kernel(x_ref, w_ref, b_ref, o_ref, *, apply_relu):
    k = pl.program_id(2)

    @pl.when(k == 0)
    def _():
        # output tile is f32 and resident across the K axis -> it IS the
        # accumulator; no extra VMEM scratch needed.
        o_ref[...] = jnp.zeros_like(o_ref)

    o_ref[...] += jnp.dot(
        x_ref[...], w_ref[...], preferred_element_type=jnp.float32
    )

    @pl.when(k == pl.num_programs(2) - 1)
    def _():
        out = o_ref[...] + b_ref[...]  # f32 bias broadcast over batch rows
        if apply_relu:
            out = jnp.maximum(out, 0.0)
        o_ref[...] = out


def pallas_linear(x, w, b, *, apply_relu, tm=128, tn=256, tk=512,
                  compute_dtype=jnp.bfloat16):
    """y = x @ w + b (optionally ReLU).  x:[M,K], w:[K,N], b:[1,N] (float32)."""
    M, K = x.shape
    K2, N = w.shape
    assert K == K2 and b.shape == (1, N)

    # Fit tiles to the (aligned) problem so small layers don't over-pad, then
    # zero-pad every dim to a whole number of tiles (exact for matmul).
    tm = min(tm, _round_up(M, 128))   # sublane-full, MXU-friendly M block
    tn = min(tn, _round_up(N, 128))   # lane-dense output
    tk = min(tk, _round_up(K, 128))
    Mp, Np, Kp = _round_up(M, tm), _round_up(N, tn), _round_up(K, tk)

    xp = _pad2d(x, Mp, Kp).astype(compute_dtype)
    wp = _pad2d(w, Kp, Np).astype(compute_dtype)
    bp = _pad2d(b, 1, Np)  # keep bias / epilogue in f32

    kernel = functools.partial(_linear_kernel, apply_relu=apply_relu)
    out = pl.pallas_call(
        kernel,
        out_shape=jax.ShapeDtypeStruct((Mp, Np), jnp.float32),
        grid_spec=pltpu.PrefetchScalarGridSpec(
            num_scalar_prefetch=0,
            grid=(Mp // tm, Np // tn, Kp // tk),
            in_specs=[
                pl.BlockSpec((tm, tk), lambda i, j, k: (i, k)),   # x tile
                pl.BlockSpec((tk, tn), lambda i, j, k: (k, j)),   # w tile
                pl.BlockSpec((1, tn), lambda i, j, k: (0, j)),    # bias
            ],
            out_specs=pl.BlockSpec((tm, tn), lambda i, j, k: (i, j)),
        ),
        compiler_params=pltpu.CompilerParams(
            dimension_semantics=("parallel", "parallel", "arbitrary"),
            vmem_limit_bytes=_VMEM_LIMIT,
        ),
    )(xp, wp, bp)
    return out[:M, :N]


# ----------------------------------------------------------------------------
# fused fc2 -> ReLU -> fc3 kernel (intermediate h2 stays in VMEM scratch)
# ----------------------------------------------------------------------------
def _fused23_kernel(x_ref, w2_ref, b2_ref, w3_ref, b3_ref, o_ref, h2_acc, *,
                    compute_dtype):
    k = pl.program_id(1)

    @pl.when(k == 0)
    def _():
        h2_acc[...] = jnp.zeros_like(h2_acc)

    h2_acc[...] += jnp.dot(
        x_ref[...], w2_ref[...], preferred_element_type=jnp.float32
    )

    @pl.when(k == pl.num_programs(1) - 1)
    def _():
        h2 = jnp.maximum(h2_acc[...] + b2_ref[...], 0.0)          # f32 epilogue
        out = jnp.dot(h2.astype(compute_dtype), w3_ref[...],
                      preferred_element_type=jnp.float32)
        o_ref[...] = out + b3_ref[...]


def pallas_fused_fc2_fc3(h1, w2, b2, w3, b3, *, tm=128, tk=512,
                         compute_dtype=jnp.bfloat16):
    """out = relu(h1 @ w2 + b2) @ w3 + b3, fused in one pallas_call."""
    M, K = h1.shape
    K2, N2 = w2.shape
    N2b, N3 = w3.shape
    assert K == K2 and N2 == N2b
    assert b2.shape == (1, N2) and b3.shape == (1, N3)

    tm = min(tm, _round_up(M, 128))
    tk = min(tk, _round_up(K, 128))
    Mp, Kp = _round_up(M, tm), _round_up(K, tk)
    N2p = _round_up(N2, 128)           # hidden2 (200 -> 256): fits VMEM whole
    N3p = _round_up(N3, 128)           # num_classes padded for lane-dense store

    h1p = _pad2d(h1, Mp, Kp).astype(compute_dtype)
    w2p = _pad2d(w2, Kp, N2p).astype(compute_dtype)
    b2p = _pad2d(b2, 1, N2p)
    w3p = _pad2d(w3, N2p, N3p).astype(compute_dtype)
    b3p = _pad2d(b3, 1, N3p)

    kernel = functools.partial(_fused23_kernel, compute_dtype=compute_dtype)
    out = pl.pallas_call(
        kernel,
        out_shape=jax.ShapeDtypeStruct((Mp, N3p), jnp.float32),
        grid_spec=pltpu.PrefetchScalarGridSpec(
            num_scalar_prefetch=0,
            grid=(Mp // tm, Kp // tk),
            in_specs=[
                pl.BlockSpec((tm, tk), lambda i, k: (i, k)),     # h1 tile
                pl.BlockSpec((tk, N2p), lambda i, k: (k, 0)),    # w2 tile
                pl.BlockSpec((1, N2p), lambda i, k: (0, 0)),     # b2 (resident)
                pl.BlockSpec((N2p, N3p), lambda i, k: (0, 0)),   # w3 (resident)
                pl.BlockSpec((1, N3p), lambda i, k: (0, 0)),     # b3 (resident)
            ],
            out_specs=pl.BlockSpec((tm, N3p), lambda i, k: (i, 0)),
            scratch_shapes=[pltpu.VMEM((tm, N2p), jnp.float32)],  # h2 accumulator
        ),
        compiler_params=pltpu.CompilerParams(
            dimension_semantics=("parallel", "arbitrary"),
            vmem_limit_bytes=_VMEM_LIMIT,
        ),
    )(h1p, w2p, b2p, w3p, b3p)
    return out[:M, :N3]


# ----------------------------------------------------------------------------
# full forward:  fc1 -> ReLU  (tiled GEMM)   then   fc2 -> ReLU -> fc3 (fused)
# ----------------------------------------------------------------------------
def mlp_forward(x, params, *, compute_dtype=jnp.bfloat16):
    h1 = pallas_linear(x, params["w1"], params["b1"], apply_relu=True,
                       compute_dtype=compute_dtype)
    return pallas_fused_fc2_fc3(h1, params["w2"], params["b2"],
                                params["w3"], params["b3"],
                                compute_dtype=compute_dtype)


def init_params(key, in_features, h1, h2, num_classes):
    """Deterministic PyTorch-style init: U(-1/sqrt(fan_in), 1/sqrt(fan_in))."""
    def linear_init(k, fan_in, fan_out):
        kw, kb = jax.random.split(k)
        bound = 1.0 / jnp.sqrt(fan_in)
        w = jax.random.uniform(kw, (fan_in, fan_out), jnp.float32, -bound, bound)
        b = jax.random.uniform(kb, (1, fan_out), jnp.float32, -bound, bound)
        return w, b

    k1, k2, k3 = jax.random.split(key, 3)
    w1, b1 = linear_init(k1, in_features, h1)
    w2, b2 = linear_init(k2, h1, h2)
    w3, b3 = linear_init(k3, h2, num_classes)
    return dict(w1=w1, b1=b1, w2=w2, b2=b2, w3=w3, b3=b3)


def ref_forward(x, params, compute_dtype=jnp.bfloat16):
    """Plain-JAX reference with the same bf16-operand / f32-accum math."""
    cd = compute_dtype

    def lin(a, w, b):
        return jnp.dot(a.astype(cd), w.astype(cd),
                       preferred_element_type=jnp.float32) + b

    h = jnp.maximum(lin(x, params["w1"], params["b1"]), 0.0)
    h = jnp.maximum(lin(h, params["w2"], params["b2"]), 0.0)
    return lin(h, params["w3"], params["b3"])


if __name__ == "__main__":
    # Small stand-ins for the module's (128*200*200, 4000, 200, num_classes).
    # HIDDEN2=200 and NUM_CLASSES=8 deliberately exercise the padding paths.
    BATCH = 8
    IN_FEATURES = 1024
    HIDDEN1 = 256
    HIDDEN2 = 200
    NUM_CLASSES = 8

    key = jax.random.PRNGKey(0)
    kx, kp = jax.random.split(key)
    x = jax.random.normal(kx, (BATCH, IN_FEATURES), jnp.float32)
    params = init_params(kp, IN_FEATURES, HIDDEN1, HIDDEN2, NUM_CLASSES)

    out = mlp_forward(x, params)
    out = jax.block_until_ready(out)

    ref = ref_forward(x, params)
    assert out.shape == (BATCH, NUM_CLASSES)
    assert jnp.allclose(out, ref, atol=1e-2, rtol=1e-2), (
        f"max abs diff {jnp.max(jnp.abs(out - ref))}"
    )

    print("KERNEL_OK")
</pallas_src>

<mosaic_0001>
module attributes {stable_mosaic.version = 11 : i64} {
  func.func @_linear_kernel(%arg0: i32, %arg1: i32, %arg2: i32, %arg3: memref<128x512xbf16, #tpu.memory_space<vmem>>, %arg4: memref<512x256xbf16, #tpu.memory_space<vmem>>, %arg5: memref<1x256xf32, #tpu.memory_space<vmem>>, %arg6: memref<128x256xf32, #tpu.memory_space<vmem>>) attributes {dimension_semantics = [#tpu.dimension_semantics<parallel>, #tpu.dimension_semantics<parallel>, #tpu.dimension_semantics<arbitrary>], iteration_bounds = array<i64: 1, 1, 2>, scalar_prefetch = 0 : i64, scratch_operands = 0 : i64, tpu.core_type = #tpu.core_type<tc>, window_params = [{transform_indices = @transform_0, window_bounds = array<i64: 128, 512>}, {transform_indices = @transform_1, window_bounds = array<i64: 512, 256>}, {transform_indices = @transform_2, window_bounds = array<i64: 1, 256>}, {transform_indices = @transform_3, window_bounds = array<i64: 128, 256>}]} {
    %c0_i32 = arith.constant 0 : i32
    %0 = arith.cmpi eq, %arg2, %c0_i32 : i32
    %1 = arith.extui %0 : i1 to i32
    %c0_i32_0 = arith.constant 0 : i32
    %2 = arith.cmpi ne, %1, %c0_i32_0 : i32
    scf.if %2 {
      %cst_9 = arith.constant 0.000000e+00 : f32
      %12 = vector.broadcast %cst_9 : f32 to vector<128x256xf32>
      %c0_10 = arith.constant 0 : index
      %c0_11 = arith.constant 0 : index
      %13 = vector.load %arg6[%c0_10, %c0_11] : memref<128x256xf32, #tpu.memory_space<vmem>>, vector<128x256xf32>
      tpu.vector_store %arg6[%c0_10, %c0_11], %12 {strides = array<i32>} : memref<128x256xf32, #tpu.memory_space<vmem>>, vector<128x256xf32>,
    } else {
    }
    %c0 = arith.constant 0 : index
    %c0_1 = arith.constant 0 : index
    %3 = vector.load %arg6[%c0, %c0_1] : memref<128x256xf32, #tpu.memory_space<vmem>>, vector<128x256xf32>
    %c0_2 = arith.constant 0 : index
    %c0_3 = arith.constant 0 : index
    %4 = vector.load %arg3[%c0_2, %c0_3] : memref<128x512xbf16, #tpu.memory_space<vmem>>, vector<128x512xbf16>
    %c0_4 = arith.constant 0 : index
    %c0_5 = arith.constant 0 : index
    %5 = vector.load %arg4[%c0_4, %c0_5] : memref<512x256xbf16, #tpu.memory_space<vmem>>, vector<512x256xbf16>
    %cst = arith.constant dense<0.000000e+00> : vector<128x256xf32>
    %6 = tpu.matmul %4, %5, %cst {dimension_numbers = #tpu.dot_dimension_numbers<[1], [0], [0], [1], [0, 0, 1, 1], [], []>} : vector<128x512xbf16>, vector<512x256xbf16>, vector<128x256xf32> -> vector<128x256xf32>
    %7 = arith.addf %3, %6 : vector<128x256xf32>
    %c0_6 = arith.constant 0 : index
    %c0_7 = arith.constant 0 : index
    %8 = vector.load %arg6[%c0_6, %c0_7] : memref<128x256xf32, #tpu.memory_space<vmem>>, vector<128x256xf32>
    tpu.vector_store %arg6[%c0_6, %c0_7], %7 {strides = array<i32>} : memref<128x256xf32, #tpu.memory_space<vmem>>, vector<128x256xf32>,
    %c1_i32 = arith.constant 1 : i32
    %9 = arith.cmpi eq, %arg2, %c1_i32 : i32
    %10 = arith.extui %9 : i1 to i32
    %c0_i32_8 = arith.constant 0 : i32
    %11 = arith.cmpi ne, %10, %c0_i32_8 : i32
    scf.if %11 {
      %c0_9 = arith.constant 0 : index
      %c0_10 = arith.constant 0 : index
      %12 = vector.load %arg6[%c0_9, %c0_10] : memref<128x256xf32, #tpu.memory_space<vmem>>, vector<128x256xf32>
      %c0_11 = arith.constant 0 : index
      %c0_12 = arith.constant 0 : index
      %13 = vector.load %arg5[%c0_11, %c0_12] : memref<1x256xf32, #tpu.memory_space<vmem>>, vector<1x256xf32>
      %14 = vector.broadcast %13 : vector<1x256xf32> to vector<128x256xf32>
      %15 = arith.addf %12, %14 : vector<128x256xf32>
      %cst_13 = arith.constant 0.000000e+00 : f32
      %16 = vector.broadcast %cst_13 : f32 to vector<128x256xf32>
      %17 = arith.maximumf %15, %16 : vector<128x256xf32>
      %c0_14 = arith.constant 0 : index
      %c0_15 = arith.constant 0 : index
      %18 = vector.load %arg6[%c0_14, %c0_15] : memref<128x256xf32, #tpu.memory_space<vmem>>, vector<128x256xf32>
      tpu.vector_store %arg6[%c0_14, %c0_15], %17 {strides = array<i32>} : memref<128x256xf32, #tpu.memory_space<vmem>>, vector<128x256xf32>,
    } else {
    }
    return
  }
  func.func @transform_0(%arg0: i32, %arg1: i32, %arg2: i32) -> (i32, i32) {
    %c0_i32 = arith.constant 0 : i32
    return %arg0, %arg2 : i32, i32
  }
  func.func @transform_1(%arg0: i32, %arg1: i32, %arg2: i32) -> (i32, i32) {
    %c0_i32 = arith.constant 0 : i32
    return %arg2, %arg1 : i32, i32
  }
  func.func @transform_2(%arg0: i32, %arg1: i32, %arg2: i32) -> (i32, i32) {
    %c0_i32 = arith.constant 0 : i32
    %c0_i32_0 = arith.constant 0 : i32
    return %c0_i32, %arg1 : i32, i32
  }
  func.func @transform_3(%arg0: i32, %arg1: i32, %arg2: i32) -> (i32, i32) {
    %c0_i32 = arith.constant 0 : i32
    return %arg0, %arg1 : i32, i32
  }
}

</mosaic_0001>

<bundles_post_ra>
// kernel: tpu_custom_call.1
= control target key start
LH: loop header
LB: loop body
LE: loop exit
PB: predicated region body
PF: predicated region fallthrough
CT: control target
= control target key end

     0   :  { %8 = vsyncpa [#allocation3], 0  ;;  %s2269_s0 = inlined_call_operand.hbm [shape: bf16[128,1024], index: 0, kind: input, shape index: {}]   ;;  %s2270_s1 = inlined_call_operand.hbm [shape: bf16[1024,256], index: 1, kind: input, shape index: {}]   ;;  %s2271_s2 = inlined_call_operand.vmem [shape: f32[1,256], index: 2, kind: input, shape index: {}]   ;;  %s2272_s3 = inlined_call_operand.hbm [shape: f32[128,256], index: 3, kind: output, shape index: {}]  }
   0x1   :  { %10 = vsyncpa [#allocation3 + $0x1], 0 }
   0x2   :  { %11 = vsyncpa [#allocation6], 0 }
   0x3   :  { %13 = vsyncpa [#allocation6 + $0x1], 0 }
   0x4   :  { %14 = vsyncpa [#allocation4], 0  ;;  %s1988_s12 = smov 0   ;;  %s1990_s13 = smov 0  }
   0x5   :  { %s1992_s14 = smov 0   ;;  %s1994_s15 = smov 0  }
   0x6   :  { %s1996_s16 = smov 0   ;;  %s1998_s17 = smov 0  }
   0x7 LB: > { %s1479_s18 = sadd.s32 4294967295, %s1955_s17   ;;  %s32_s19 = sadd.s32 1, %s1951_s16  ;;  %s1955_s17 = sphi %s1998_s17, %s20_s17   ;;  %s1951_s16 = sphi %s1996_s16, %s2282_s16   ;;  %s1947_s15 = sphi %s1994_s15, %s2281_s15   ;;  %s1943_s14 = sphi %s1992_s14, %s2280_s14   ;;  %s1939_s13 = sphi %s1990_s13, %s2279_s13   ;;  %s1935_s12 = sphi %s1988_s12, %s2278_s12  }
   0x8   : > { %p33_p0 = scmp.ge.s32.totalorder %s32_s19, 2  ;;  %s48_s20 = sadd.s32 1, %s1943_s14 }
   0x9   : > { %p55_p1 = scmp.ne.s32.totalorder %s1943_s14, %s1939_s13  ;;  %p56_p2 = scmp.eq.s32.totalorder %s1955_s17, 0 }
   0xa   : > { %s2284_s19 = smov (%p33_p0, %s32_s19), 0  ;;  %p61_p4 = scmp.ne.s32.totalorder %s1939_s13, %s1935_s12 }
   0xb   : > { %p2024_p3 = por %p56_p2, %p55_p1  ;;  %s44_s22 = ssub.s32 %s1951_s16, %s2284_s19 }
   0xc   : > { %p62_p5 = scmp.eq.s32.totalorder %s1479_s18, 0  ;;  %p46_p6 = scmp.eq.s32.totalorder %s44_s22, 0 }
   0xd   : > { %p1613_p8 = scmp.lt.s32.totalorder %s1955_s17, 2  ;;  %s2042_s25 = sand.u32 1, %s1943_s14  }
   0xe   : > { %p2033_p7 = por %p62_p5, %p61_p4  ;;  %s1595_s26 = sshll.u32 %s1951_s16, 8 }
   0xf   : > { %s2039_s24 = scalar_select %p46_p6, %s1943_s14, %s48_s20  }
  0x10   : > { %s1483_s27 = sshll.u32 %s2042_s25, 8  ;;  %s188_s30 = scalar_lea.hbm %s2269_s0, %s1595_s26 }
  0x11   : > { %s179_s4 = scalar_lea.vmem [#allocation2], %s1483_s27  ;;  %p2051_p9 = pnand %p1613_p8, %p2024_p3 }
  0x12   : > { %s189_s5 = sshll.u32 %s179_s4, 4  ;;  %p1490_p10 = scmp.ge.s32.totalorder %s1955_s17, 1  ;;  %s190_s5 = int_to_ptr.vmem [resolvable:$true] %s189_s5 }
  0x13   : > { %s176_s7 = scalar_lea.sflag [#allocation3], %s2042_s25  ;;  %p1819_p11 = pneg %p2051_p9 }
  0x14   : > { %s1830_s8 = scalar_lea.vmem %s190_s5, 4096  ;;  %s1957_s9 = smov [#allocation2]  }
  0x15   : > { %p1831_p12 = scmp.ne.s32.totalorder %s190_s5, %s1830_s8  ;;  %s1835_s10 = sshll.u32 %s1957_s9, 4  ;;  %s1836_s10 = int_to_ptr.vmem [resolvable:$false] %s1835_s10 }
  0x16   : > { %s1837_s11 = scalar_lea.vmem %s1836_s10, 8192  ;;  %p1838_p1 = scmp.lt.s32.totalorder %s190_s5, %s1836_s10 }
  0x17   : > { %p1833_p13 = pnand %p1831_p12, %p1819_p11  ;;  %p1839_p2 = scmp.lt.s32.totalorder %s1837_s11, %s1830_s8 }
  0x19   : > { %p1834_p0 = pneg %p1833_p13  ;;  %p1840_p3 = por %p1839_p2, %p1838_p1 }
  0x1b   : > { %p1841_p4 = pnand %p1840_p3, %p1834_p0 }
  0x1d   : > { %1844 = shalt.err (!%p1841_p4)
}
  0x1e   : > { %s1958_s12 = smov 512   ;;  %s1959_s20 = smov 256  }
  0x1f   : > { %s1960_s21 = smov 16   ;;  %p221_p5 = scmp.lt.s32.totalorder %s1955_s17, 3 }
  0x20   : > { %1609 = dma.hbm_to_vmem [thread:$0]  (!%p2051_p9), %s188_s30, 4096, %s190_s5, %s176_s7, %s1958_s12, %s1959_s20, %s1960_s21  }
  0x21   : > { %s1486_s22 = sshll.u32 %s2042_s25, 9  ;;  %s1597_s26 = sshll.u32 %s1951_s16, 13 }
  0x22   : > { %p2069_p6 = pnand %p1490_p10, %p221_p5  ;;  %s212_s4 = scalar_lea.hbm %s2270_s1, %s1597_s26 }
  0x23   : > { %s203_s8 = scalar_lea.vmem [#allocation5], %s1486_s22  ;;  %s200_s10 = scalar_lea.sflag [#allocation6], %s2042_s25 }
  0x24   : > { %s213_s9 = sshll.u32 %s203_s8, 4  ;;  %s1961_s30 = smov [#allocation5]   ;;  %s214_s9 = int_to_ptr.vmem [resolvable:$true] %s213_s9 }
  0x25   : > { %s1858_s11 = scalar_lea.vmem %s214_s9, 8192  ;;  %s1863_s5 = sshll.u32 %s1961_s30, 4  ;;  %s1864_s5 = int_to_ptr.vmem [resolvable:$false] %s1863_s5 }
  0x26   : > { %p1859_p8 = scmp.ne.s32.totalorder %s214_s9, %s1858_s11  ;;  %s1865_s7 = scalar_lea.vmem %s1864_s5, 16384 }
  0x27   : > { %p1866_p10 = scmp.lt.s32.totalorder %s214_s9, %s1864_s5  ;;  %p1867_p0 = scmp.lt.s32.totalorder %s1865_s7, %s1858_s11 }
  0x28   : > { %p1861_p12 = pnand %p1859_p8, %p1819_p11 }
  0x29   : > { %p1868_p1 = por %p1867_p0, %p1866_p10 }
  0x2a   : > { %p1862_p13 = pneg %p1861_p12 }
  0x2c   : > { %p1869_p2 = pnand %p1868_p1, %p1862_p13 }
  0x2e   : > { %1872 = shalt.err (!%p1869_p2)
}
  0x2f   : > { %s1962_s12 = smov 128   ;;  %s1963_s20 = smov 8  }
  0x30   : > { %1612 = dma.hbm_to_vmem [thread:$0]  (!%p2051_p9), %s212_s4, 8192, %s214_s9, %s200_s10, %s1962_s12, %s1962_s12, %s1963_s20  }
  0x31   : > { %225 = sbr.rel (%p2069_p6) target bundleno = 453 (0x1c5), region = 32  ;;  %s227_s25 = sand.u32 (!%p2069_p6), 1, %s1939_s13  }
  0x32   : > { %s1491_s21 = sshll.u32 (!%p2069_p6), %s227_s25, 8  ;;  %s228_s22 = scalar_lea.sflag (!%p2069_p6), [#allocation3], %s227_s25 }
  0x33   : > { %s2085_s26 = scalar_lea.vmem (!%p2069_p6), [#allocation2], %s1491_s21 }
  0x36   : > { %1922 = dma.done.wait (%p2033_p7), %s228_s22, 4096  }
  0x37   : > { %1924 = vsyncadd (%p2033_p7), %s228_s22, 4294963200  ;;  %s1492_s28 = sshll.u32 %s227_s25, 9  ;;  %s237_s29 = scalar_lea.sflag [#allocation6], %s227_s25 }
  0x38   : > { %s2091_s6 = scalar_lea.vmem [#allocation5], %s1492_s28 }
  0x39   : > { %1926 = dma.done.wait (%p2033_p7), %s237_s29, 8192  }
  0x3a   : > { %1928 = vsyncadd (%p2033_p7), %s237_s29, 4294959104  ;;  %p1493_p9 = scmp.ne.s32.totalorder %s1947_s15, 0 }
  0x3c   : > { %281 = sbr.rel (%p1493_p9) target bundleno = 82 (0x52), region = 44 }
  0x41   : > { %v1964_v0 = vmov 0.0  }
  0x42   : > { %282 = vst [vmem:[#allocation7] sm:$0xff] %v1964_v0  ;;  %283 = vst [vmem:[#allocation7 + $0x8] sm:$0xff] %v1964_v0 }
  0x43   : > { %284 = vst [vmem:[#allocation7 + $0x10] sm:$0xff] %v1964_v0  ;;  %285 = vst [vmem:[#allocation7 + $0x18] sm:$0xff] %v1964_v0 }
  0x44   : > { %286 = vst [vmem:[#allocation7 + $0x20] sm:$0xff] %v1964_v0  ;;  %287 = vst [vmem:[#allocation7 + $0x28] sm:$0xff] %v1964_v0 }
  0x45   : > { %288 = vst [vmem:[#allocation7 + $0x30] sm:$0xff] %v1964_v0  ;;  %289 = vst [vmem:[#allocation7 + $0x38] sm:$0xff] %v1964_v0 }
  0x46   : > { %290 = vst [vmem:[#allocation7 + $0x40] sm:$0xff] %v1964_v0  ;;  %291 = vst [vmem:[#allocation7 + $0x48] sm:$0xff] %v1964_v0 }
  0x47   : > { %292 = vst [vmem:[#allocation7 + $0x50] sm:$0xff] %v1964_v0  ;;  %293 = vst [vmem:[#allocation7 + $0x58] sm:$0xff] %v1964_v0 }
  0x48   : > { %294 = vst [vmem:[#allocation7 + $0x60] sm:$0xff] %v1964_v0  ;;  %295 = vst [vmem:[#allocation7 + $0x68] sm:$0xff] %v1964_v0 }
  0x49   : > { %296 = vst [vmem:[#allocation7 + $0x70] sm:$0xff] %v1964_v0  ;;  %297 = vst [vmem:[#allocation7 + $0x78] sm:$0xff] %v1964_v0 }
  0x4a   : > { %298 = vst [vmem:[#allocation7 + $0x80] sm:$0xff] %v1964_v0  ;;  %299 = vst [vmem:[#allocation7 + $0x88] sm:$0xff] %v1964_v0 }
  0x4b   : > { %300 = vst [vmem:[#allocation7 + $0x90] sm:$0xff] %v1964_v0  ;;  %301 = vst [vmem:[#allocation7 + $0x98] sm:$0xff] %v1964_v0 }
  0x4c   : > { %302 = vst [vmem:[#allocation7 + $0xa0] sm:$0xff] %v1964_v0  ;;  %303 = vst [vmem:[#allocation7 + $0xa8] sm:$0xff] %v1964_v0 }
  0x4d   : > { %304 = vst [vmem:[#allocation7 + $0xb0] sm:$0xff] %v1964_v0  ;;  %305 = vst [vmem:[#allocation7 + $0xb8] sm:$0xff] %v1964_v0 }
  0x4e   : > { %306 = vst [vmem:[#allocation7 + $0xc0] sm:$0xff] %v1964_v0  ;;  %307 = vst [vmem:[#allocation7 + $0xc8] sm:$0xff] %v1964_v0 }
  0x4f   : > { %308 = vst [vmem:[#allocation7 + $0xd0] sm:$0xff] %v1964_v0  ;;  %309 = vst [vmem:[#allocation7 + $0xd8] sm:$0xff] %v1964_v0 }
  0x50   : > { %310 = vst [vmem:[#allocation7 + $0xe0] sm:$0xff] %v1964_v0  ;;  %311 = vst [vmem:[#allocation7 + $0xe8] sm:$0xff] %v1964_v0 }
  0x51   : > { %312 = vst [vmem:[#allocation7 + $0xf0] sm:$0xff] %v1964_v0  ;;  %313 = vst [vmem:[#allocation7 + $0xf8] sm:$0xff] %v1964_v0 }
  0x52 PF: > { %v1673_v1 = vld [vmem:[%s2091_s6 + $0x74] ss:$8 sps:$4 sm:$0xff]   ;;  %v1677_v3 = vld [vmem:[%s2091_s6 + $0x70] ss:$8 sps:$4 sm:$0xff]   ;;  %v1679_v5 = vld [vmem:[%s2091_s6 + $0x64] ss:$8 sps:$4 sm:$0xff]  }
  0x53   : > { %v1675_v2 = vld [vmem:[%s2091_s6 + $0x174] ss:$8 sps:$4 sm:$0xff]   ;;  %922 = vmatprep.subr.bf16.mxu0 %v1673_v1  ;;  %v1678_v4 = vld [vmem:[%s2091_s6 + $0x170] ss:$8 sps:$4 sm:$0xff]   ;;  %v1681_v6 = vld [vmem:[%s2091_s6 + $0x164] ss:$8 sps:$4 sm:$0xff]  }
  0x54   : > { %1035 = vmatprep.subr.bf16.mxu1 %v1675_v2  ;;  %923 = vmatpush1.bf16.msra.mxu0 %v1677_v3  ;;  %v1683_v7 = vld [vmem:[%s2091_s6 + $0x60] ss:$8 sps:$4 sm:$0xff]   ;;  %v1685_v9 = vld [vmem:[%s2091_s6 + $0x54] ss:$8 sps:$4 sm:$0xff]   ;;  %v1689_v11 = vld [vmem:[%s2091_s6 + $0x50] ss:$8 sps:$4 sm:$0xff]  }
  0x55   : > { %1036 = vmatpush1.bf16.msra.mxu1 %v1678_v4  ;;  %924 = vmatprep.subr.bf16.mxu0 %v1679_v5  ;;  %v1684_v8 = vld [vmem:[%s2091_s6 + $0x160] ss:$8 sps:$4 sm:$0xff]   ;;  %v1687_v10 = vld [vmem:[%s2091_s6 + $0x154] ss:$8 sps:$4 sm:$0xff]   ;;  %v1690_v12 = vld [vmem:[%s2091_s6 + $0x150] ss:$8 sps:$4 sm:$0xff]  }
  0x56   : > { %1037 = vmatprep.subr.bf16.mxu1 %v1681_v6  ;;  %v1691_v13 = vld [vmem:[%s2091_s6 + $0x44] ss:$8 sps:$4 sm:$0xff]   ;;  %v1695_v15 = vld [vmem:[%s2091_s6 + $0x40] ss:$8 sps:$4 sm:$0xff]   ;;  %v1697_v17 = vld [vmem:[%s2091_s6 + $0x34] ss:$8 sps:$4 sm:$0xff]  }
  0x57   : > { %v1693_v14 = vld [vmem:[%s2091_s6 + $0x144] ss:$8 sps:$4 sm:$0xff]   ;;  %v1696_v16 = vld [vmem:[%s2091_s6 + $0x140] ss:$8 sps:$4 sm:$0xff]   ;;  %v1699_v18 = vld [vmem:[%s2091_s6 + $0x134] ss:$8 sps:$4 sm:$0xff]  }
  0x58   : > { %925 = vmatpush1.bf16.msra.mxu0 %v1683_v7  ;;  %v1701_v19 = vld [vmem:[%s2091_s6 + $0x30] ss:$8 sps:$4 sm:$0xff]   ;;  %v1703_v21 = vld [vmem:[%s2091_s6 + $0x24] ss:$8 sps:$4 sm:$0xff]   ;;  %v1707_v23 = vld [vmem:[%s2091_s6 + $0x20] ss:$8 sps:$4 sm:$0xff]  }
  0x59   : > { %1038 = vmatpush1.bf16.msra.mxu1 %v1684_v8  ;;  %926 = vmatprep.subr.bf16.mxu0 %v1685_v9  ;;  %v1702_v20 = vld [vmem:[%s2091_s6 + $0x130] ss:$8 sps:$4 sm:$0xff]   ;;  %v1705_v22 = vld [vmem:[%s2091_s6 + $0x124] ss:$8 sps:$4 sm:$0xff]   ;;  %v1708_v24 = vld [vmem:[%s2091_s6 + $0x120] ss:$8 sps:$4 sm:$0xff]  }
  0x5a   : > { %1039 = vmatprep.subr.bf16.mxu1 %v1687_v10  ;;  %v1709_v25 = vld [vmem:[%s2091_s6 + $0x14] ss:$8 sps:$4 sm:$0xff]   ;;  %v1713_v27 = vld [vmem:[%s2091_s6 + $0x10] ss:$8 sps:$4 sm:$0xff]   ;;  %v1715_v29 = vld [vmem:[%s2091_s6 + $0x4] ss:$8 sps:$4 sm:$0xff]  }
  0x5b   : > { %v1711_v26 = vld [vmem:[%s2091_s6 + $0x114] ss:$8 sps:$4 sm:$0xff]   ;;  %v1714_v28 = vld [vmem:[%s2091_s6 + $0x110] ss:$8 sps:$4 sm:$0xff]   ;;  %v1717_v30 = vld [vmem:[%s2091_s6 + $0x104] ss:$8 sps:$4 sm:$0xff]  }
  0x5c   : > { %927 = vmatpush1.bf16.msra.mxu0 %v1689_v11  ;;  %v1719_v31 = vld [vmem:[%s2091_s6] ss:$8 sps:$4 sm:$0xff]   ;;  %v1721_v33 = vld [vmem:[%s2091_s6 + $0xf4] ss:$8 sps:$4 sm:$0xff]   ;;  %v1725_v35 = vld [vmem:[%s2091_s6 + $0xf0] ss:$8 sps:$4 sm:$0xff]  }
  0x5d   : > { %1040 = vmatpush1.bf16.msra.mxu1 %v1690_v12  ;;  %928 = vmatprep.subr.bf16.mxu0 %v1691_v13  ;;  %v1720_v32 = vld [vmem:[%s2091_s6 + $0x100] ss:$8 sps:$4 sm:$0xff]   ;;  %v1723_v34 = vld [vmem:[%s2091_s6 + $0x1f4] ss:$8 sps:$4 sm:$0xff]   ;;  %v1726_v36 = vld [vmem:[%s2091_s6 + $0x1f0] ss:$8 sps:$4 sm:$0xff]  }
  0x5e   : > { %1041 = vmatprep.subr.bf16.mxu1 %v1693_v14  ;;  %v1727_v37 = vld [vmem:[%s2091_s6 + $0xe4] ss:$8 sps:$4 sm:$0xff]   ;;  %v1731_v39 = vld [vmem:[%s2091_s6 + $0xe0] ss:$8 sps:$4 sm:$0xff]   ;;  %v1733_v41 = vld [vmem:[%s2091_s6 + $0xd4] ss:$8 sps:$4 sm:$0xff]  }
  0x5f   : > { %v1729_v38 = vld [vmem:[%s2091_s6 + $0x1e4] ss:$8 sps:$4 sm:$0xff]   ;;  %v1732_v40 = vld [vmem:[%s2091_s6 + $0x1e0] ss:$8 sps:$4 sm:$0xff]   ;;  %v1735_v42 = vld [vmem:[%s2091_s6 + $0x1d4] ss:$8 sps:$4 sm:$0xff]  }
  0x60   : > { %929 = vmatpush1.bf16.msra.mxu0 %v1695_v15  ;;  %v1737_v43 = vld [vmem:[%s2091_s6 + $0xd0] ss:$8 sps:$4 sm:$0xff]   ;;  %v1739_v45 = vld [vmem:[%s2091_s6 + $0xc4] ss:$8 sps:$4 sm:$0xff]   ;;  %v1743_v47 = vld [vmem:[%s2091_s6 + $0xc0] ss:$8 sps:$4 sm:$0xff]  }
  0x61   : > { %1042 = vmatpush1.bf16.msra.mxu1 %v1696_v16  ;;  %930 = vmatprep.subr.bf16.mxu0 %v1697_v17  ;;  %v1738_v44 = vld [vmem:[%s2091_s6 + $0x1d0] ss:$8 sps:$4 sm:$0xff]   ;;  %v1741_v46 = vld [vmem:[%s2091_s6 + $0x1c4] ss:$8 sps:$4 sm:$0xff]   ;;  %v1744_v48 = vld [vmem:[%s2091_s6 + $0x1c0] ss:$8 sps:$4 sm:$0xff]  }
  0x62   : > { %1043 = vmatprep.subr.bf16.mxu1 %v1699_v18  ;;  %v1745_v49 = vld [vmem:[%s2091_s6 + $0xb4] ss:$8 sps:$4 sm:$0xff]   ;;  %v1749_v53 = vld [vmem:[%s2091_s6 + $0xb0] ss:$8 sps:$4 sm:$0xff]   ;;  %v1751_v55 = vld [vmem:[%s2091_s6 + $0xa4] ss:$8 sps:$4 sm:$0xff]  }
  0x63   : > { %v1771_v50 = vld [vmem:[%s2085_s26 + $0x4] ss:$16 sps:$4 sm:$0xff]   ;;  %v1774_v52 = vld [vmem:[%s2085_s26 + $0xc] ss:$16 sps:$4 sm:$0xff]   ;;  %v1750_v54 = vld [vmem:[%s2091_s6 + $0x1b0] ss:$8 sps:$4 sm:$0xff]  }
  0x64   : > { %931 = vmatpush1.bf16.msra.mxu0 %v1701_v19  ;;  %v1747_v51 = vld [vmem:[%s2091_s6 + $0x1b4] ss:$8 sps:$4 sm:$0xff]   ;;  %954 = vmatprep.mubr.bf16.mxu0 %v1771_v50  ;;  %v1753_v56 = vld [vmem:[%s2091_s6 + $0x1a4] ss:$8 sps:$4 sm:$0xff]   ;;  %v1755_v57 = vld [vmem:[%s2091_s6 + $0xa0] ss:$8 sps:$4 sm:$0xff]  }
  0x65   : > { %1044 = vmatpush1.bf16.msra.mxu1 %v1702_v20  ;;  %932 = vmatprep.subr.bf16.mxu0 %v1703_v21  ;;  %v1756_v58 = vld [vmem:[%s2091_s6 + $0x1a0] ss:$8 sps:$4 sm:$0xff]   ;;  %v1757_v59 = vld [vmem:[%s2091_s6 + $0x94] ss:$8 sps:$4 sm:$0xff]   ;;  %v1761_v61 = vld [vmem:[%s2091_s6 + $0x90] ss:$8 sps:$4 sm:$0xff]  }
  0x66   : > { %1045 = vmatprep.subr.bf16.mxu1 %v1705_v22  ;;  %1067 = vmatprep.mubr.bf16.mxu1 %v1774_v52  ;;  %v1759_v60 = vld [vmem:[%s2091_s6 + $0x194] ss:$8 sps:$4 sm:$0xff]   ;;  %v1762_v62 = vld [vmem:[%s2091_s6 + $0x190] ss:$8 sps:$4 sm:$0xff]   ;;  %v1763_v63 = vld [vmem:[%s2091_s6 + $0x84] ss:$8 sps:$4 sm:$0xff]  }
  0x67   : > { %v1765_v0 = vld [vmem:[%s2091_s6 + $0x184] ss:$8 sps:$4 sm:$0xff]   ;;  %v1767_v1 = vld [vmem:[%s2091_s6 + $0x80] ss:$8 sps:$4 sm:$0xff]   ;;  %p1590_p7 = scmp.ne.s32.totalorder %s1947_s15, 1 }
  0x68   : > { %933 = vmatpush1.bf16.msra.mxu0 %v1707_v23  ;;  %v1768_v2 = vld [vmem:[%s2091_s6 + $0x180] ss:$8 sps:$4 sm:$0xff]   ;;  %v1775_v5 = vld [vmem:[%s2085_s26 + $0x24] ss:$16 sps:$4 sm:$0xff]   ;;  %v1777_v6 = vld [vmem:[%s2085_s26 + $0x2c] ss:$16 sps:$4 sm:$0xff]  }
  0x69   : > { %1046 = vmatpush1.bf16.msra.mxu1 %v1708_v24  ;;  %934 = vmatprep.subr.bf16.mxu0 %v1709_v25  ;;  %v1769_v3 = vld [vmem:[%s2085_s26] ss:$16 sps:$4 sm:$0xff]   ;;  %v1772_v4 = vld [vmem:[%s2085_s26 + $0x8] ss:$16 sps:$4 sm:$0xff]   ;;  %v1781_v9 = vld [vmem:[%s2085_s26 + $0x44] ss:$16 sps:$4 sm:$0xff]  }
  0x6a   : > { %1047 = vmatprep.subr.bf16.mxu1 %v1711_v26  ;;  %v1779_v7 = vld [vmem:[%s2085_s26 + $0x20] ss:$16 sps:$4 sm:$0xff]   ;;  %v1780_v8 = vld [vmem:[%s2085_s26 + $0x28] ss:$16 sps:$4 sm:$0xff]   ;;  %v1783_v10 = vld [vmem:[%s2085_s26 + $0x4c] ss:$16 sps:$4 sm:$0xff]  }
  0x6b   : > { %v1785_v11 = vld [vmem:[%s2085_s26 + $0x40] ss:$16 sps:$4 sm:$0xff]   ;;  %v1786_v12 = vld [vmem:[%s2085_s26 + $0x48] ss:$16 sps:$4 sm:$0xff]   ;;  %v1787_v13 = vld [vmem:[%s2085_s26 + $0x64] ss:$16 sps:$4 sm:$0xff]  }
  0x6c   : > { %935 = vmatpush1.bf16.msra.mxu0 %v1713_v27  ;;  %v1789_v14 = vld [vmem:[%s2085_s26 + $0x6c] ss:$16 sps:$4 sm:$0xff]   ;;  %v1791_v15 = vld [vmem:[%s2085_s26 + $0x60] ss:$16 sps:$4 sm:$0xff]   ;;  %v1792_v16 = vld [vmem:[%s2085_s26 + $0x68] ss:$16 sps:$4 sm:$0xff]  }
  0x6d   : > { %1048 = vmatpush1.bf16.msra.mxu1 %v1714_v28  ;;  %936 = vmatprep.subr.bf16.mxu0 %v1715_v29  ;;  %v1793_v17 = vld [vmem:[%s2085_s26 + $0x84] ss:$16 sps:$4 sm:$0xff]   ;;  %v1795_v18 = vld [vmem:[%s2085_s26 + $0x8c] ss:$16 sps:$4 sm:$0xff]   ;;  %v1797_v19 = vld [vmem:[%s2085_s26 + $0x80] ss:$16 sps:$4 sm:$0xff]  }
  0x6e   : > { %1049 = vmatprep.subr.bf16.mxu1 %v1717_v30  ;;  %v1798_v20 = vld [vmem:[%s2085_s26 + $0x88] ss:$16 sps:$4 sm:$0xff]   ;;  %v1799_v21 = vld [vmem:[%s2085_s26 + $0xa4] ss:$16 sps:$4 sm:$0xff]   ;;  %v1801_v22 = vld [vmem:[%s2085_s26 + $0xac] ss:$16 sps:$4 sm:$0xff]  }
  0x6f   : > { %v1803_v23 = vld [vmem:[%s2085_s26 + $0xa0] ss:$16 sps:$4 sm:$0xff]   ;;  %v1804_v24 = vld [vmem:[%s2085_s26 + $0xa8] ss:$16 sps:$4 sm:$0xff]   ;;  %v1805_v25 = vld [vmem:[%s2085_s26 + $0xc4] ss:$16 sps:$4 sm:$0xff]  }
  0x70   : > { %937 = vmatpush1.bf16.msra.mxu0 %v1719_v31  ;;  %v1807_v26 = vld [vmem:[%s2085_s26 + $0xcc] ss:$16 sps:$4 sm:$0xff]   ;;  %v1809_v27 = vld [vmem:[%s2085_s26 + $0xc0] ss:$16 sps:$4 sm:$0xff]   ;;  %v1810_v28 = vld [vmem:[%s2085_s26 + $0xc8] ss:$16 sps:$4 sm:$0xff]  }
  0x71   : > { %1050 = vmatpush1.bf16.msra.mxu1 %v1720_v32  ;;  %938 = vmatprep.subr.bf16.mxu0 %v1721_v33  ;;  %v1811_v29 = vld [vmem:[%s2085_s26 + $0xe4] ss:$16 sps:$4 sm:$0xff]   ;;  %v1813_v30 = vld [vmem:[%s2085_s26 + $0xec] ss:$16 sps:$4 sm:$0xff]   ;;  %v1815_v31 = vld [vmem:[%s2085_s26 + $0xe0] ss:$16 sps:$4 sm:$0xff]  }
  0x72   : > { %1051 = vmatprep.subr.bf16.mxu1 %v1723_v34  ;;  %v1816_v32 = vld [vmem:[%s2085_s26 + $0xe8] ss:$16 sps:$4 sm:$0xff]   ;;  %v314_v34 = vld [vmem:[#allocation7] sm:$0xff] }
  0x74   : > { %939 = vmatpush2.bf16.msra.mxu0 %v1725_v35 }
  0x75   : > { %1052 = vmatpush2.bf16.msra.mxu1 %v1726_v36  ;;  %940 = vmatprep.subr.bf16.mxu0 %v1727_v37 }
  0x76   : > { %1053 = vmatprep.subr.bf16.mxu1 %v1729_v38  ;;  %v315_v38 = vld [vmem:[#allocation7 + $0x8] sm:$0xff] }
  0x78   : > { %941 = vmatpush2.bf16.msra.mxu0 %v1731_v39 }
  0x79   : > { %1054 = vmatpush2.bf16.msra.mxu1 %v1732_v40  ;;  %942 = vmatprep.subr.bf16.mxu0 %v1733_v41 }
  0x7a   : > { %1055 = vmatprep.subr.bf16.mxu1 %v1735_v42 }
  0x7c   : > { %943 = vmatpush2.bf16.msra.mxu0 %v1737_v43  ;;  %v316_v43 = vld [vmem:[#allocation7 + $0x10] sm:$0xff] }
  0x7d   : > { %1056 = vmatpush2.bf16.msra.mxu1 %v1738_v44  ;;  %944 = vmatprep.subr.bf16.mxu0 %v1739_v45 }
  0x7e   : > { %1057 = vmatprep.subr.bf16.mxu1 %v1741_v46 }
  0x80   : > { %945 = vmatpush2.bf16.msra.mxu0 %v1743_v47 }
  0x81   : > { %1058 = vmatpush2.bf16.msra.mxu1 %v1744_v48  ;;  %946 = vmatprep.subr.bf16.mxu0 %v1745_v49  ;;  %v317_v48 = vld [vmem:[#allocation7 + $0x18] sm:$0xff] }
  0x82   : > { %1059 = vmatprep.subr.bf16.mxu1 %v1747_v51 }
  0x84   : > { %947 = vmatpush2.bf16.msra.mxu0 %v1749_v53  ;;  %v318_v53 = vld [vmem:[#allocation7 + $0x20] sm:$0xff] }
  0x85   : > { %1060 = vmatpush2.bf16.msra.mxu1 %v1750_v54  ;;  %948 = vmatprep.subr.bf16.mxu0 %v1751_v55 }
  0x86   : > { %1061 = vmatprep.subr.bf16.mxu1 %v1753_v56 }
  0x88   : > { %949 = vmatpush2.bf16.msra.mxu0 %v1755_v57 }
  0x89   : > { %1062 = vmatpush2.bf16.msra.mxu1 %v1756_v58  ;;  %950 = vmatprep.subr.bf16.mxu0 %v1757_v59  ;;  %v319_v58 = vld [vmem:[#allocation7 + $0x28] sm:$0xff] }
  0x8a   : > { %1063 = vmatprep.subr.bf16.mxu1 %v1759_v60 }
  0x8c   : > { %951 = vmatpush2.bf16.msra.mxu0 %v1761_v61 }
  0x8d   : > { %1064 = vmatpush2.bf16.msra.mxu1 %v1762_v62  ;;  %952 = vmatprep.subr.bf16.mxu0 %v1763_v63  ;;  %v320_v63 = vld [vmem:[#allocation7 + $0x30] sm:$0xff] }
  0x8e   : > { %1065 = vmatprep.subr.bf16.mxu1 %v1765_v0 }
  0x90   : > { %953 = vmatpush2.bf16.msra.mxu0 %v1767_v1 }
  0x91   : > { %1066 = vmatpush2.bf16.msra.mxu1 %v1768_v2 }
  0x93   : > { %955 = vmatmul.mubr.bf16.vlgmr.msra.gmra.mxu0 %v1769_v3 }
  0x94   : > { %1068 = vmatmul.mubr.bf16.vlgmr.msra.gmra.mxu1 %v1772_v4  ;;  %964 = vmatprep.mubr.bf16.mxu0 %v1775_v5  ;;  %v321_v4 = vld [vmem:[#allocation7 + $0x38] sm:$0xff] }
  0x95   : > { %1077 = vmatprep.mubr.bf16.mxu1 %v1777_v6 }
  0x9b   : > { %965 = vmatmul.mubr.bf16.gmra.mxu0 %v1779_v7 }
  0x9c   : > { %1078 = vmatmul.mubr.bf16.gmra.mxu1 %v1780_v8  ;;  %974 = vmatprep.mubr.bf16.mxu0 %v1781_v9  ;;  %v322_v9 = vld [vmem:[#allocation7 + $0x40] sm:$0xff] }
  0x9d   : > { %1087 = vmatprep.mubr.bf16.mxu1 %v1783_v10 }
  0xa3   : > { %975 = vmatmul.mubr.bf16.gmra.mxu0 %v1785_v11 }
  0xa4   : > { %1088 = vmatmul.mubr.bf16.gmra.mxu1 %v1786_v12  ;;  %984 = vmatprep.mubr.bf16.mxu0 %v1787_v13 }
  0xa5   : > { %1097 = vmatprep.mubr.bf16.mxu1 %v1789_v14  ;;  %v323_v14 = vld [vmem:[#allocation7 + $0x48] sm:$0xff] }
  0xab   : > { %985 = vmatmul.mubr.bf16.gmra.mxu0 %v1791_v15 }
  0xac   : > { %1098 = vmatmul.mubr.bf16.gmra.mxu1 %v1792_v16  ;;  %994 = vmatprep.mubr.bf16.mxu0 %v1793_v17 }
  0xad   : > { %1107 = vmatprep.mubr.bf16.mxu1 %v1795_v18 }
  0xb3   : > { %995 = vmatmul.mubr.bf16.gmra.mxu0 %v1797_v19  ;;  %v324_v19 = vld [vmem:[#allocation7 + $0x50] sm:$0xff] }
  0xb4   : > { %1108 = vmatmul.mubr.bf16.gmra.mxu1 %v1798_v20  ;;  %1004 = vmatprep.mubr.bf16.mxu0 %v1799_v21 }
  0xb5   : > { %1117 = vmatprep.mubr.bf16.mxu1 %v1801_v22 }
  0xbb   : > { %1005 = vmatmul.mubr.bf16.gmra.mxu0 %v1803_v23 }
  0xbc   : > { %1118 = vmatmul.mubr.bf16.gmra.mxu1 %v1804_v24  ;;  %1014 = vmatprep.mubr.bf16.mxu0 %v1805_v25  ;;  %v325_v24 = vld [vmem:[#allocation7 + $0x58] sm:$0xff] }
  0xbd   : > { %1127 = vmatprep.mubr.bf16.mxu1 %v1807_v26 }
  0xc3   : > { %1015 = vmatmul.mubr.bf16.gmra.mxu0 %v1809_v27 }
  0xc4   : > { %1128 = vmatmul.mubr.bf16.gmra.mxu1 %v1810_v28  ;;  %1024 = vmatprep.mubr.bf16.mxu0 %v1811_v29  ;;  %v326_v29 = vld [vmem:[#allocation7 + $0x60] sm:$0xff] }
  0xc5   : > { %1137 = vmatprep.mubr.bf16.mxu1 %v1813_v30 }
  0xcb   : > { %1025 = vmatmul.mubr.bf16.gmra.mxu0 %v1815_v31 }
  0xcc   : > { %1138 = vmatmul.mubr.bf16.gmra.mxu1 %v1816_v32 }
 0x153   : > { %v956_v33 = vpop.f32.mrf.mxu0 }
 0x154   : > { %v1069_v35 = vpop.f32.mrf.mxu1 }
 0x155   : > { %v1070_v36 = vadd.f32 %v1069_v35, %v956_v33  ;;  %v958_v37 = vpop.f32.mrf.mxu0 }
 0x156   : > { %v1071_v39 = vpop.f32.mrf.mxu1 }
 0x157   : > { %v1148_v40 = vadd.f32 %v1070_v36, %v314_v34  ;;  %v1072_v41 = vadd.f32 %v1071_v39, %v958_v37  ;;  %v960_v42 = vpop.f32.mrf.mxu0  ;;  %v327_v34 = vld [vmem:[#allocation7 + $0x68] sm:$0xff]  ;;  %v328_v39 = vld [vmem:[#allocation7 + $0x70] sm:$0xff] }
 0x158   : > { %v1073_v44 = vpop.f32.mrf.mxu1 }
 0x159   : > { %1180 = vst [vmem:[#allocation7] sm:$0xff] %v1148_v40  ;;  %v1149_v45 = vadd.f32 %v1072_v41, %v315_v38  ;;  %v1074_v46 = vadd.f32 %v1073_v44, %v960_v42  ;;  %v962_v47 = vpop.f32.mrf.mxu0  ;;  %v329_v44 = vld [vmem:[#allocation7 + $0x78] sm:$0xff] }
 0x15a   : > { %v1075_v49 = vpop.f32.mrf.mxu1 }
 0x15b   : > { %1181 = vst [vmem:[#allocation7 + $0x8] sm:$0xff] %v1149_v45  ;;  %v1150_v50 = vadd.f32 %v1074_v46, %v316_v43  ;;  %v1076_v51 = vadd.f32 %v1075_v49, %v962_v47  ;;  %v966_v52 = vpop.f32.mrf.mxu0  ;;  %v330_v49 = vld [vmem:[#allocation7 + $0x80] sm:$0xff] }
 0x15c   : > { %v1079_v54 = vpop.f32.mrf.mxu1 }
 0x15d   : > { %1182 = vst [vmem:[#allocation7 + $0x10] sm:$0xff] %v1150_v50  ;;  %v1151_v55 = vadd.f32 %v1076_v51, %v317_v48  ;;  %v1080_v56 = vadd.f32 %v1079_v54, %v966_v52  ;;  %v968_v57 = vpop.f32.mrf.mxu0  ;;  %v331_v54 = vld [vmem:[#allocation7 + $0x88] sm:$0xff] }
 0x15e   : > { %v1081_v59 = vpop.f32.mrf.mxu1 }
 0x15f   : > { %1183 = vst [vmem:[#allocation7 + $0x18] sm:$0xff] %v1151_v55  ;;  %v1152_v60 = vadd.f32 %v1080_v56, %v318_v53  ;;  %v1082_v61 = vadd.f32 %v1081_v59, %v968_v57  ;;  %v970_v62 = vpop.f32.mrf.mxu0  ;;  %v332_v59 = vld [vmem:[#allocation7 + $0x90] sm:$0xff] }
 0x160   : > { %v1083_v0 = vpop.f32.mrf.mxu1 }
 0x161   : > { %1184 = vst [vmem:[#allocation7 + $0x20] sm:$0xff] %v1152_v60  ;;  %v1153_v1 = vadd.f32 %v1082_v61, %v319_v58  ;;  %v1084_v2 = vadd.f32 %v1083_v0, %v970_v62  ;;  %v972_v3 = vpop.f32.mrf.mxu0  ;;  %v333_v0 = vld [vmem:[#allocation7 + $0x98] sm:$0xff] }
 0x162   : > { %v1085_v5 = vpop.f32.mrf.mxu1 }
 0x163   : > { %1185 = vst [vmem:[#allocation7 + $0x28] sm:$0xff] %v1153_v1  ;;  %v1154_v6 = vadd.f32 %v1084_v2, %v320_v63  ;;  %v1086_v7 = vadd.f32 %v1085_v5, %v972_v3  ;;  %v976_v8 = vpop.f32.mrf.mxu0  ;;  %v334_v5 = vld [vmem:[#allocation7 + $0xa0] sm:$0xff] }
 0x164   : > { %v1089_v10 = vpop.f32.mrf.mxu1 }
 0x165   : > { %1186 = vst [vmem:[#allocation7 + $0x30] sm:$0xff] %v1154_v6  ;;  %v1155_v11 = vadd.f32 %v1086_v7, %v321_v4  ;;  %v1090_v12 = vadd.f32 %v1089_v10, %v976_v8  ;;  %v978_v13 = vpop.f32.mrf.mxu0  ;;  %v335_v10 = vld [vmem:[#allocation7 + $0xa8] sm:$0xff] }
 0x166   : > { %v1091_v15 = vpop.f32.mrf.mxu1 }
 0x167   : > { %1187 = vst [vmem:[#allocation7 + $0x38] sm:$0xff] %v1155_v11  ;;  %v1156_v16 = vadd.f32 %v1090_v12, %v322_v9  ;;  %v1092_v17 = vadd.f32 %v1091_v15, %v978_v13  ;;  %v980_v18 = vpop.f32.mrf.mxu0  ;;  %v336_v15 = vld [vmem:[#allocation7 + $0xb0] sm:$0xff] }
 0x168   : > { %v1093_v20 = vpop.f32.mrf.mxu1 }
 0x169   : > { %1188 = vst [vmem:[#allocation7 + $0x40] sm:$0xff] %v1156_v16  ;;  %v1157_v21 = vadd.f32 %v1092_v17, %v323_v14  ;;  %v1094_v22 = vadd.f32 %v1093_v20, %v980_v18  ;;  %v982_v23 = vpop.f32.mrf.mxu0  ;;  %v337_v20 = vld [vmem:[#allocation7 + $0xb8] sm:$0xff] }
 0x16a   : > { %v1095_v25 = vpop.f32.mrf.mxu1 }
 0x16b   : > { %1189 = vst [vmem:[#allocation7 + $0x48] sm:$0xff] %v1157_v21  ;;  %v1158_v26 = vadd.f32 %v1094_v22, %v324_v19  ;;  %v1096_v27 = vadd.f32 %v1095_v25, %v982_v23  ;;  %v986_v28 = vpop.f32.mrf.mxu0  ;;  %v338_v25 = vld [vmem:[#allocation7 + $0xc0] sm:$0xff] }
 0x16c   : > { %v1099_v30 = vpop.f32.mrf.mxu1 }
 0x16d   : > { %1190 = vst [vmem:[#allocation7 + $0x50] sm:$0xff] %v1158_v26  ;;  %v1159_v31 = vadd.f32 %v1096_v27, %v325_v24  ;;  %v1100_v32 = vadd.f32 %v1099_v30, %v986_v28  ;;  %v988_v33 = vpop.f32.mrf.mxu0  ;;  %v339_v30 = vld [vmem:[#allocation7 + $0xc8] sm:$0xff] }
 0x16e   : > { %v1101_v35 = vpop.f32.mrf.mxu1 }
 0x16f   : > { %1191 = vst [vmem:[#allocation7 + $0x58] sm:$0xff] %v1159_v31  ;;  %v1160_v36 = vadd.f32 %v1100_v32, %v326_v29  ;;  %v1102_v37 = vadd.f32 %v1101_v35, %v988_v33  ;;  %v990_v38 = vpop.f32.mrf.mxu0  ;;  %v340_v35 = vld [vmem:[#allocation7 + $0xd0] sm:$0xff] }
 0x170   : > { %v1103_v40 = vpop.f32.mrf.mxu1 }
 0x171   : > { %1192 = vst [vmem:[#allocation7 + $0x60] sm:$0xff] %v1160_v36  ;;  %v1161_v41 = vadd.f32 %v1102_v37, %v327_v34  ;;  %v1104_v42 = vadd.f32 %v1103_v40, %v990_v38  ;;  %v992_v43 = vpop.f32.mrf.mxu0  ;;  %v341_v40 = vld [vmem:[#allocation7 + $0xd8] sm:$0xff] }
 0x172   : > { %v1105_v45 = vpop.f32.mrf.mxu1 }
 0x173   : > { %1193 = vst [vmem:[#allocation7 + $0x68] sm:$0xff] %v1161_v41  ;;  %v1162_v46 = vadd.f32 %v1104_v42, %v328_v39  ;;  %v1106_v47 = vadd.f32 %v1105_v45, %v992_v43  ;;  %v996_v48 = vpop.f32.mrf.mxu0  ;;  %v342_v45 = vld [vmem:[#allocation7 + $0xe0] sm:$0xff] }
 0x174   : > { %v1109_v50 = vpop.f32.mrf.mxu1 }
 0x175   : > { %1194 = vst [vmem:[#allocation7 + $0x70] sm:$0xff] %v1162_v46  ;;  %v1163_v51 = vadd.f32 %v1106_v47, %v329_v44  ;;  %v1110_v52 = vadd.f32 %v1109_v50, %v996_v48  ;;  %v998_v53 = vpop.f32.mrf.mxu0  ;;  %v343_v50 = vld [vmem:[#allocation7 + $0xe8] sm:$0xff] }
 0x176   : > { %v1111_v55 = vpop.f32.mrf.mxu1 }
 0x177   : > { %1195 = vst [vmem:[#allocation7 + $0x78] sm:$0xff] %v1163_v51  ;;  %v1164_v56 = vadd.f32 %v1110_v52, %v330_v49  ;;  %v1112_v57 = vadd.f32 %v1111_v55, %v998_v53  ;;  %v1000_v58 = vpop.f32.mrf.mxu0  ;;  %v344_v55 = vld [vmem:[#allocation7 + $0xf0] sm:$0xff] }
 0x178   : > { %v1113_v60 = vpop.f32.mrf.mxu1 }
 0x179   : > { %1196 = vst [vmem:[#allocation7 + $0x80] sm:$0xff] %v1164_v56  ;;  %v1165_v61 = vadd.f32 %v1112_v57, %v331_v54  ;;  %v1114_v62 = vadd.f32 %v1113_v60, %v1000_v58  ;;  %v1002_v63 = vpop.f32.mrf.mxu0  ;;  %v345_v60 = vld [vmem:[#allocation7 + $0xf8] sm:$0xff] }
 0x17a   : > { %v1115_v1 = vpop.f32.mrf.mxu1 }
 0x17b   : > { %1197 = vst [vmem:[#allocation7 + $0x88] sm:$0xff] %v1165_v61  ;;  %v1166_v2 = vadd.f32 %v1114_v62, %v332_v59  ;;  %v1116_v3 = vadd.f32 %v1115_v1, %v1002_v63  ;;  %v1006_v4 = vpop.f32.mrf.mxu0 }
 0x17c   : > { %v1119_v6 = vpop.f32.mrf.mxu1 }
 0x17d   : > { %1198 = vst [vmem:[#allocation7 + $0x90] sm:$0xff] %v1166_v2  ;;  %v1167_v7 = vadd.f32 %v1116_v3, %v333_v0  ;;  %v1120_v8 = vadd.f32 %v1119_v6, %v1006_v4  ;;  %v1008_v9 = vpop.f32.mrf.mxu0 }
 0x17e   : > { %v1121_v11 = vpop.f32.mrf.mxu1 }
 0x17f   : > { %1199 = vst [vmem:[#allocation7 + $0x98] sm:$0xff] %v1167_v7  ;;  %v1168_v12 = vadd.f32 %v1120_v8, %v334_v5  ;;  %v1122_v13 = vadd.f32 %v1121_v11, %v1008_v9  ;;  %v1010_v14 = vpop.f32.mrf.mxu0 }
 0x180   : > { %v1123_v16 = vpop.f32.mrf.mxu1 }
 0x181   : > { %1200 = vst [vmem:[#allocation7 + $0xa0] sm:$0xff] %v1168_v12  ;;  %v1169_v17 = vadd.f32 %v1122_v13, %v335_v10  ;;  %v1124_v18 = vadd.f32 %v1123_v16, %v1010_v14  ;;  %v1012_v19 = vpop.f32.mrf.mxu0 }
 0x182   : > { %v1125_v21 = vpop.f32.mrf.mxu1 }
 0x183   : > { %1201 = vst [vmem:[#allocation7 + $0xa8] sm:$0xff] %v1169_v17  ;;  %v1170_v22 = vadd.f32 %v1124_v18, %v336_v15  ;;  %v1126_v23 = vadd.f32 %v1125_v21, %v1012_v19  ;;  %v1016_v24 = vpop.f32.mrf.mxu0 }
 0x184   : > { %v1129_v26 = vpop.f32.mrf.mxu1 }
 0x185   : > { %1202 = vst [vmem:[#allocation7 + $0xb0] sm:$0xff] %v1170_v22  ;;  %v1171_v27 = vadd.f32 %v1126_v23, %v337_v20  ;;  %v1130_v28 = vadd.f32 %v1129_v26, %v1016_v24  ;;  %v1018_v29 = vpop.f32.mrf.mxu0 }
 0x186   : > { %v1131_v31 = vpop.f32.mrf.mxu1 }
 0x187   : > { %1203 = vst [vmem:[#allocation7 + $0xb8] sm:$0xff] %v1171_v27  ;;  %v1172_v32 = vadd.f32 %v1130_v28, %v338_v25  ;;  %v1132_v33 = vadd.f32 %v1131_v31, %v1018_v29  ;;  %v1020_v34 = vpop.f32.mrf.mxu0 }
 0x188   : > { %v1133_v36 = vpop.f32.mrf.mxu1 }
 0x189   : > { %1204 = vst [vmem:[#allocation7 + $0xc0] sm:$0xff] %v1172_v32  ;;  %v1173_v37 = vadd.f32 %v1132_v33, %v339_v30  ;;  %v1134_v38 = vadd.f32 %v1133_v36, %v1020_v34  ;;  %v1022_v39 = vpop.f32.mrf.mxu0 }
 0x18a   : > { %v1135_v41 = vpop.f32.mrf.mxu1 }
 0x18b   : > { %1205 = vst [vmem:[#allocation7 + $0xc8] sm:$0xff] %v1173_v37  ;;  %v1174_v42 = vadd.f32 %v1134_v38, %v340_v35  ;;  %v1136_v43 = vadd.f32 %v1135_v41, %v1022_v39  ;;  %v1026_v44 = vpop.f32.mrf.mxu0 }
 0x18c   : > { %v1139_v46 = vpop.f32.mrf.mxu1 }
 0x18d   : > { %1206 = vst [vmem:[#allocation7 + $0xd0] sm:$0xff] %v1174_v42  ;;  %v1175_v47 = vadd.f32 %v1136_v43, %v341_v40  ;;  %v1140_v48 = vadd.f32 %v1139_v46, %v1026_v44  ;;  %v1028_v49 = vpop.f32.mrf.mxu0 }
 0x18e   : > { %v1141_v51 = vpop.f32.mrf.mxu1 }
 0x18f   : > { %1207 = vst [vmem:[#allocation7 + $0xd8] sm:$0xff] %v1175_v47  ;;  %v1176_v52 = vadd.f32 %v1140_v48, %v342_v45  ;;  %v1142_v53 = vadd.f32 %v1141_v51, %v1028_v49  ;;  %v1030_v54 = vpop.f32.mrf.mxu0 }
 0x190   : > { %v1143_v56 = vpop.f32.mrf.mxu1 }
 0x191   : > { %1208 = vst [vmem:[#allocation7 + $0xe0] sm:$0xff] %v1176_v52  ;;  %v1177_v57 = vadd.f32 %v1142_v53, %v343_v50  ;;  %v1144_v58 = vadd.f32 %v1143_v56, %v1030_v54  ;;  %v1032_v59 = vpop.f32.mrf.mxu0 }
 0x192   : > { %v1145_v61 = vpop.f32.mrf.mxu1 }
 0x193   : > { %1209 = vst [vmem:[#allocation7 + $0xe8] sm:$0xff] %v1177_v57  ;;  %v1178_v62 = vadd.f32 %v1144_v58, %v344_v55  ;;  %v1146_v63 = vadd.f32 %v1145_v61, %v1032_v59  ;;  %1215 = sbr.rel (%p1590_p7) target bundleno = 437 (0x1b5), region = 48 }
 0x195   : > { %1210 = vst [vmem:[#allocation7 + $0xf0] sm:$0xff] %v1178_v62  ;;  %v1179_v0 = vadd.f32 %v1146_v63, %v345_v60 }
 0x197   : > { %1211 = vst [vmem:[#allocation7 + $0xf8] sm:$0xff] %v1179_v0 }
 0x198   : > { %v1250_v1 = vlaneseq  ;;  %v1248_v3 = vld [vmem:[%s2271_s2] sm:$0x3]  ;;  %v1217_v6 = vld [vmem:[#allocation7 + $0x8] sm:$0xff]  ;;  %v1218_v8 = vld [vmem:[#allocation7 + $0x10] sm:$0xff] }
 0x199   : > { %v1216_v4 = vld [vmem:[#allocation7] sm:$0xff]  ;;  %v1219_v9 = vld [vmem:[#allocation7 + $0x18] sm:$0xff]  ;;  %v1221_v13 = vld [vmem:[#allocation7 + $0x28] sm:$0xff] }
 0x19a   : > { %v1251_v2 = vshrl.u32 %v1250_v1, 7  ;;  %v1220_v10 = vld [vmem:[#allocation7 + $0x20] sm:$0xff]  ;;  %v1222_v14 = vld [vmem:[#allocation7 + $0x30] sm:$0xff]  ;;  %v1223_v15 = vld [vmem:[#allocation7 + $0x38] sm:$0xff] }
 0x19b   : > { %v1224_v20 = vld [vmem:[#allocation7 + $0x40] sm:$0xff]  ;;  %v1225_v21 = vld [vmem:[#allocation7 + $0x48] sm:$0xff]  ;;  %v1226_v22 = vld [vmem:[#allocation7 + $0x50] sm:$0xff] }
 0x19c   : > { %v1252_v5 = vsub.s32 0, %v1251_v2  ;;  %v1256_v7 = vsub.s32 1, %v1251_v2  ;;  %v1227_v27 = vld [vmem:[#allocation7 + $0x58] sm:$0xff]  ;;  %v1228_v28 = vld [vmem:[#allocation7 + $0x60] sm:$0xff]  ;;  %v1229_v29 = vld [vmem:[#allocation7 + $0x68] sm:$0xff] }
 0x19d   : > { %v1230_v34 = vld [vmem:[#allocation7 + $0x70] sm:$0xff]  ;;  %v1231_v35 = vld [vmem:[#allocation7 + $0x78] sm:$0xff]  ;;  %v1232_v44 = vld [vmem:[#allocation7 + $0x80] sm:$0xff] }
 0x19e   : > { %v2198_v11 = vrot.slane %v1248_v3, %v1252_v5  ;;  %v2200_v12 = vrot.slane %v1248_v3, %v1256_v7  ;;  %v1233_v45 = vld [vmem:[#allocation7 + $0x88] sm:$0xff]  ;;  %v1234_v46 = vld [vmem:[#allocation7 + $0x90] sm:$0xff]  ;;  %v1235_v51 = vld [vmem:[#allocation7 + $0x98] sm:$0xff] }
 0x19f   : > { %v1236_v52 = vld [vmem:[#allocation7 + $0xa0] sm:$0xff]  ;;  %v1237_v53 = vld [vmem:[#allocation7 + $0xa8] sm:$0xff]  ;;  %v1238_v58 = vld [vmem:[#allocation7 + $0xb0] sm:$0xff] }
 0x1a0   : > { %v1260_v16 = vadd.f32 %v2198_v11, %v1216_v4  ;;  %v1261_v17 = vadd.f32 %v2200_v12, %v1217_v6  ;;  %v1262_v18 = vadd.f32 %v2198_v11, %v1218_v8  ;;  %v1263_v19 = vadd.f32 %v2200_v12, %v1219_v9  ;;  %v1239_v59 = vld [vmem:[#allocation7 + $0xb8] sm:$0xff]  ;;  %v1240_v4 = vld [vmem:[#allocation7 + $0xc0] sm:$0xff]  ;;  %v1241_v5 = vld [vmem:[#allocation7 + $0xc8] sm:$0xff] }
 0x1a1   : > { %v1264_v23 = vadd.f32 %v2198_v11, %v1220_v10  ;;  %v1265_v24 = vadd.f32 %v2200_v12, %v1221_v13  ;;  %v1266_v25 = vadd.f32 %v2198_v11, %v1222_v14  ;;  %v1267_v26 = vadd.f32 %v2200_v12, %v1223_v15  ;;  %v1242_v6 = vld [vmem:[#allocation7 + $0xd0] sm:$0xff]  ;;  %v1243_v13 = vld [vmem:[#allocation7 + $0xd8] sm:$0xff]  ;;  %v1244_v14 = vld [vmem:[#allocation7 + $0xe0] sm:$0xff] }
 0x1a2   : > { %v1292_v30 = vmax.f32 %v1260_v16, 0.0  ;;  %v1293_v31 = vmax.f32 %v1261_v17, 0.0  ;;  %v1294_v32 = vmax.f32 %v1262_v18, 0.0  ;;  %v1295_v33 = vmax.f32 %v1263_v19, 0.0  ;;  %v1245_v15 = vld [vmem:[#allocation7 + $0xe8] sm:$0xff] }
 0x1a3   : > { %v1296_v36 = vmax.f32 %v1264_v23, 0.0  ;;  %v1297_v37 = vmax.f32 %v1265_v24, 0.0  ;;  %v1298_v38 = vmax.f32 %v1266_v25, 0.0  ;;  %v1299_v39 = vmax.f32 %v1267_v26, 0.0 }
 0x1a4   : > { %1324 = vst [vmem:[#allocation7] sm:$0xff] %v1292_v30  ;;  %1325 = vst [vmem:[#allocation7 + $0x8] sm:$0xff] %v1293_v31  ;;  %v1268_v40 = vadd.f32 %v2198_v11, %v1224_v20  ;;  %v1269_v41 = vadd.f32 %v2200_v12, %v1225_v21  ;;  %v1270_v42 = vadd.f32 %v2198_v11, %v1226_v22  ;;  %v1246_v20 = vld [vmem:[#allocation7 + $0xf0] sm:$0xff]  ;;  %v1247_v21 = vld [vmem:[#allocation7 + $0xf8] sm:$0xff] }
 0x1a5   : > { %1326 = vst [vmem:[#allocation7 + $0x10] sm:$0xff] %v1294_v32  ;;  %1327 = vst [vmem:[#allocation7 + $0x18] sm:$0xff] %v1295_v33  ;;  %v1271_v43 = vadd.f32 %v2200_v12, %v1227_v27  ;;  %v1272_v47 = vadd.f32 %v2198_v11, %v1228_v28  ;;  %v1273_v48 = vadd.f32 %v2200_v12, %v1229_v29 }
 0x1a6   : > { %1328 = vst [vmem:[#allocation7 + $0x20] sm:$0xff] %v1296_v36  ;;  %1329 = vst [vmem:[#allocation7 + $0x28] sm:$0xff] %v1297_v37  ;;  %v1274_v49 = vadd.f32 %v2198_v11, %v1230_v34  ;;  %v1275_v50 = vadd.f32 %v2200_v12, %v1231_v35  ;;  %v1300_v54 = vmax.f32 %v1268_v40, 0.0  ;;  %v1301_v55 = vmax.f32 %v1269_v41, 0.0 }
 0x1a7   : > { %1330 = vst [vmem:[#allocation7 + $0x30] sm:$0xff] %v1298_v38  ;;  %1331 = vst [vmem:[#allocation7 + $0x38] sm:$0xff] %v1299_v39  ;;  %v1302_v56 = vmax.f32 %v1270_v42, 0.0  ;;  %v1303_v57 = vmax.f32 %v1271_v43, 0.0  ;;  %v1304_v60 = vmax.f32 %v1272_v47, 0.0  ;;  %v1305_v61 = vmax.f32 %v1273_v48, 0.0 }
 0x1a8   : > { %v1306_v62 = vmax.f32 %v1274_v49, 0.0  ;;  %v1307_v63 = vmax.f32 %v1275_v50, 0.0  ;;  %1332 = vst [vmem:[#allocation7 + $0x40] sm:$0xff] %v1300_v54  ;;  %1333 = vst [vmem:[#allocation7 + $0x48] sm:$0xff] %v1301_v55  ;;  %v1276_v0 = vadd.f32 %v2198_v11, %v1232_v44  ;;  %v1277_v1 = vadd.f32 %v2200_v12, %v1233_v45 }
 0x1a9   : > { %1334 = vst [vmem:[#allocation7 + $0x50] sm:$0xff] %v1302_v56  ;;  %1335 = vst [vmem:[#allocation7 + $0x58] sm:$0xff] %v1303_v57  ;;  %v1278_v2 = vadd.f32 %v2198_v11, %v1234_v46  ;;  %v1279_v3 = vadd.f32 %v2200_v12, %v1235_v51  ;;  %v1280_v7 = vadd.f32 %v2198_v11, %v1236_v52 }
 0x1aa   : > { %1336 = vst [vmem:[#allocation7 + $0x60] sm:$0xff] %v1304_v60  ;;  %1337 = vst [vmem:[#allocation7 + $0x68] sm:$0xff] %v1305_v61  ;;  %v1281_v8 = vadd.f32 %v2200_v12, %v1237_v53  ;;  %v1282_v9 = vadd.f32 %v2198_v11, %v1238_v58  ;;  %v1283_v10 = vadd.f32 %v2200_v12, %v1239_v59  ;;  %v1308_v16 = vmax.f32 %v1276_v0, 0.0 }
 0x1ab   : > { %1338 = vst [vmem:[#allocation7 + $0x70] sm:$0xff] %v1306_v62  ;;  %1339 = vst [vmem:[#allocation7 + $0x78] sm:$0xff] %v1307_v63  ;;  %v1309_v17 = vmax.f32 %v1277_v1, 0.0  ;;  %v1310_v18 = vmax.f32 %v1278_v2, 0.0  ;;  %v1311_v19 = vmax.f32 %v1279_v3, 0.0  ;;  %v1312_v22 = vmax.f32 %v1280_v7, 0.0 }
 0x1ac   : > { %v1313_v23 = vmax.f32 %v1281_v8, 0.0  ;;  %v1314_v24 = vmax.f32 %v1282_v9, 0.0  ;;  %v1315_v25 = vmax.f32 %v1283_v10, 0.0  ;;  %1340 = vst [vmem:[#allocation7 + $0x80] sm:$0xff] %v1308_v16  ;;  %v1284_v26 = vadd.f32 %v2198_v11, %v1240_v4 }
 0x1ad   : > { %1341 = vst [vmem:[#allocation7 + $0x88] sm:$0xff] %v1309_v17  ;;  %1342 = vst [vmem:[#allocation7 + $0x90] sm:$0xff] %v1310_v18  ;;  %v1285_v27 = vadd.f32 %v2200_v12, %v1241_v5  ;;  %v1286_v28 = vadd.f32 %v2198_v11, %v1242_v6  ;;  %v1287_v29 = vadd.f32 %v2200_v12, %v1243_v13 }
 0x1ae   : > { %1343 = vst [vmem:[#allocation7 + $0x98] sm:$0xff] %v1311_v19  ;;  %1344 = vst [vmem:[#allocation7 + $0xa0] sm:$0xff] %v1312_v22  ;;  %v1288_v30 = vadd.f32 %v2198_v11, %v1244_v14  ;;  %v1289_v31 = vadd.f32 %v2200_v12, %v1245_v15  ;;  %v1290_v32 = vadd.f32 %v2198_v11, %v1246_v20  ;;  %v1316_v34 = vmax.f32 %v1284_v26, 0.0 }
 0x1af   : > { %1345 = vst [vmem:[#allocation7 + $0xa8] sm:$0xff] %v1313_v23  ;;  %1346 = vst [vmem:[#allocation7 + $0xb0] sm:$0xff] %v1314_v24  ;;  %v1291_v33 = vadd.f32 %v2200_v12, %v1247_v21  ;;  %v1317_v35 = vmax.f32 %v1285_v27, 0.0  ;;  %v1318_v36 = vmax.f32 %v1286_v28, 0.0  ;;  %v1319_v37 = vmax.f32 %v1287_v29, 0.0 }
 0x1b0   : > { %1347 = vst [vmem:[#allocation7 + $0xb8] sm:$0xff] %v1315_v25  ;;  %v1320_v38 = vmax.f32 %v1288_v30, 0.0  ;;  %v1321_v39 = vmax.f32 %v1289_v31, 0.0  ;;  %v1322_v40 = vmax.f32 %v1290_v32, 0.0  ;;  %1348 = vst [vmem:[#allocation7 + $0xc0] sm:$0xff] %v1316_v34 }
 0x1b1   : > { %v1323_v41 = vmax.f32 %v1291_v33, 0.0  ;;  %1349 = vst [vmem:[#allocation7 + $0xc8] sm:$0xff] %v1317_v35  ;;  %1350 = vst [vmem:[#allocation7 + $0xd0] sm:$0xff] %v1318_v36 }
 0x1b2   : > { %1351 = vst [vmem:[#allocation7 + $0xd8] sm:$0xff] %v1319_v37  ;;  %1352 = vst [vmem:[#allocation7 + $0xe0] sm:$0xff] %v1320_v38 }
 0x1b3   : > { %1353 = vst [vmem:[#allocation7 + $0xe8] sm:$0xff] %v1321_v39  ;;  %1354 = vst [vmem:[#allocation7 + $0xf0] sm:$0xff] %v1322_v40 }
 0x1b4   : > { %1355 = vst [vmem:[#allocation7 + $0xf8] sm:$0xff] %v1323_v41 }
 0x1b5 PF: > { %p2236_p11 = scmp.eq.s32.totalorder %s1479_s18, 1  ;;  %s1965_s4 = smov [#allocation7]  }
 0x1b6   : > { %s1368_s8 = sshll.u32 %s1965_s4, 4  ;;  %s1369_s8 = int_to_ptr.vmem [resolvable:$true] %s1368_s8 }
 0x1b7   : > { %s1873_s9 = scalar_lea.vmem %s1369_s8, 4096  ;;  %p1880_p6 = scmp.lt.s32.totalorder %s1369_s8, %s1369_s8 }
 0x1b8   : > { %p1874_p3 = scmp.ne.s32.totalorder %s1369_s8, %s1873_s9  ;;  %p1881_p8 = scmp.lt.s32.totalorder %s1873_s9, %s1873_s9 }
 0x1ba   : > { %p1875_p4 = pnand %p1874_p3, %p2236_p11  ;;  %p1882_p12 = por %p1881_p8, %p1880_p6 }
 0x1bc   : > { %p1876_p5 = pneg %p1875_p4 }
 0x1be   : > { %p1883_p13 = pnand %p1882_p12, %p1876_p5 }
 0x1c0   : > { %1886 = shalt.err (!%p1883_p13)
}
 0x1c1   : > { %s1966_s10 = smov 256   ;;  %s1967_s18 = smov 16  }
 0x1c2   : > { %1603 = dma.vmem_to_hbm [thread:$0]  (%p2236_p11), %s1369_s8, 4096, %s2272_s3, [#allocation4], %s1966_s10, %s1966_s10, %s1967_s18  }
 0x1c3   : > { %1930 = dma.done.wait (%p2236_p11), [#allocation4], 4096  }
 0x1c4   : > { %1932 = vsyncadd (%p2236_p11), [#allocation4], 4294963200 }
 0x1c5 PF: > { %s20_s17 = sadd.s32 1, %s1955_s17   ;;  %s2278_s12 = smov %s1939_s13 }
 0x1c6   : > { %p17_p10 = scmp.ge.s32.totalorder %s20_s17, 4   ;;  %s2279_s13 = smov %s1943_s14 }
 0x1c7   : > { %s2280_s14 = smov %s2039_s24  ;;  %s2281_s15 = smov %s1951_s16 }
 0x1c8   : > { %s2282_s16 = smov %s2284_s19  ;;  %19 = sbr.rel (!%p17_p10) target bundleno = 7 (0x7), region = 94 }
 0x1cd   :  { %1384 = vsyncpa [#allocation3], 1 }
 0x1ce   :  { %1386 = vsyncpa [#allocation3 + $0x1], 1 }
 0x1cf   :  { %1387 = vsyncpa [#allocation6], 1 }
 0x1d0   :  { %1389 = vsyncpa [#allocation6 + $0x1], 1 }
 0x1d1   :  { %1390 = vsyncpa [#allocation4], 1 }
 0x1d2   :  { %1392 = vsyncpa [#allocation4 + $0x1], 1 }

</bundles_post_ra>
